<compile_context>
chip_gen: v7x
topology: tpu7x:2x2x1
jax: 0.10.0
libtpu: 0.0.40
codegen_flags: <defaults>
</compile_context>

<pallas_src>
import functools

import jax
import jax.numpy as jnp
from jax.experimental import pallas as pl
from jax.experimental.pallas import tpu as pltpu


def _round_up(x, m):
    return ((x + m - 1) // m) * m


def _pick_tk(K, N, L, tk=None):
    """Largest K-tile (multiple of 128) that keeps double-buffered f32 tiles
    comfortably under the scoped-VMEM default on all generations."""
    if tk is None:
        budget = 20 * 1024 * 1024                    # ~20 MiB of VMEM tiles
        bytes_per_col = 4 * (2 * N + 2 * L + N)      # 2x out, 2x frames, 1x acc
        tk = budget // max(bytes_per_col, 1)
    tk = max(128, (tk // 128) * 128)
    tk = min(tk, 4096)                               # diminishing returns past this
    tk = min(tk, _round_up(K, 128))                  # never (much) wider than K
    return tk


def _encoder_kernel(fr_ref, w_ref, o_ref):
    # fr_ref: (1, L, tk)  frame columns, K lane-dense
    # w_ref:  (N, L)      full conv kernel
    # o_ref:  (1, N, tk)  output already in [N, K] orientation
    acc = jnp.dot(
        w_ref[...], fr_ref[0],
        preferred_element_type=jnp.float32,
        precision=jax.lax.Precision.HIGHEST,         # strict f32 parity w/ PyTorch
    )
    o_ref[0] = jnp.maximum(acc, 0.0).astype(o_ref.dtype)


def encoder_forward(mixture, weight, L, *, tk=None):
    """mixture: [M, T] f32; weight: [N, L] f32 (PyTorch conv weight [N,1,L] squeezed).

    Returns relu(conv1d_U(mixture)) with shape [M, N, K], K = (T-L)//(L//2)+1.
    """
    M, T = mixture.shape
    N, Lw = weight.shape
    assert Lw == L and L % 2 == 0, "kernel requires stride == L // 2 exactly"
    stride = L // 2
    K = (T - L) // stride + 1

    # ---- cheap host-side prep, all O(M*T) (output is O(M*N*K) >> this) ----
    # Non-overlapping stride-chunks, transposed so the frame index K lands in
    # the lane dimension, then fused into one [M, L, K] frames array:
    #   frames[m, l, k] = mixture[m, k*stride + l]
    used = (K + 1) * stride                          # drops PyTorch's tail samples
    chunks = mixture[:, :used].reshape(M, K + 1, stride)   # free reshape
    ct = jnp.swapaxes(chunks, 1, 2)                         # [M, stride, K+1]
    frames = jnp.concatenate([ct[:, :, :K], ct[:, :, 1:K + 1]], axis=1)  # [M, L, K]

    tk = _pick_tk(K, N, L, tk)
    num_k_tiles = pl.cdiv(K, tk)

    cost = pl.CostEstimate(
        flops=2 * M * K * L * N,
        transcendentals=0,
        bytes_accessed=4 * (M * L * K + N * L + M * N * K),
    )

    return pl.pallas_call(
        _encoder_kernel,
        out_shape=jax.ShapeDtypeStruct((M, N, K), mixture.dtype),
        grid_spec=pltpu.PrefetchScalarGridSpec(
            num_scalar_prefetch=0,
            grid=(num_k_tiles, M),                   # big K axis first (megacore)
            in_specs=[
                pl.BlockSpec((1, L, tk), lambda i, m: (m, 0, i)),
                pl.BlockSpec((N, L), lambda i, m: (0, 0)),
            ],
            out_specs=pl.BlockSpec((1, N, tk), lambda i, m: (m, 0, i)),
        ),
        compiler_params=pltpu.CompilerParams(
            dimension_semantics=("parallel", "parallel")),
        cost_estimate=cost,
    )(frames, weight)


def reference_forward(mixture, weight, L):
    """Pure-JAX reference of the strided conv1d + relu -> [M, N, K]."""
    M, T = mixture.shape
    stride = L // 2
    K = (T - L) // stride + 1
    idx = jnp.arange(K)[:, None] * stride + jnp.arange(L)[None, :]
    frames = mixture[:, idx]                         # [M, K, L]
    return jnp.maximum(
        jnp.einsum("mkl,nl->mnk", frames, weight,
                   precision=jax.lax.Precision.HIGHEST),
        0.0)


if __name__ == "__main__":
    # Small, module-consistent shapes: batch M=2, T=1613 samples, L=16, N=32
    # -> K = (1613-16)//8 + 1 = 200  (exercises the tail-sample drop and,
    # with tk=128 forced below, the masked partial last K tile).
    M, T = 2, 1613
    L, N = 16, 32

    key = jax.random.PRNGKey(0)
    k_mix, k_w = jax.random.split(key)
    mixture = jax.random.normal(k_mix, (M, T), dtype=jnp.float32)

    # Deterministic conv1d_U weight, PyTorch shape [N, 1, L]; squeeze to [N, L].
    conv_w = jax.random.normal(k_w, (N, 1, L), dtype=jnp.float32) * 0.1
    weight = conv_w[:, 0, :]                         # [N, L]

    enc = jax.jit(functools.partial(encoder_forward, L=L, tk=128))
    out = enc(mixture, weight)
    out = jax.block_until_ready(out)

    ref = reference_forward(mixture, weight, L)
    K = (T - L) // (L // 2) + 1
    assert out.shape == (M, N, K)
    assert jnp.allclose(out, ref, atol=1e-5, rtol=1e-5)

    print("KERNEL_OK")
</pallas_src>

<mosaic_0001>
module attributes {stable_mosaic.version = 11 : i64} {
  func.func @_encoder_kernel(%arg0: i32, %arg1: i32, %arg2: memref<1x16x128xf32, #tpu.memory_space<vmem>>, %arg3: memref<32x16xf32, #tpu.memory_space<vmem>>, %arg4: memref<1x32x128xf32, #tpu.memory_space<vmem>>) attributes {dimension_semantics = [#tpu.dimension_semantics<parallel>, #tpu.dimension_semantics<parallel>], iteration_bounds = array<i64: 2, 2>, scalar_prefetch = 0 : i64, scratch_operands = 0 : i64, tpu.core_type = #tpu.core_type<tc>, window_params = [{transform_indices = @transform_0, window_bounds = array<i64: 1, 16, 128>}, {pipeline_mode = #tpu.pipeline_mode<synchronous>, transform_indices = @transform_1, window_bounds = array<i64: 32, 16>}, {transform_indices = @transform_2, window_bounds = array<i64: 1, 32, 128>}]} {
    %c0 = arith.constant 0 : index
    %c0_0 = arith.constant 0 : index
    %0 = vector.load %arg3[%c0, %c0_0] : memref<32x16xf32, #tpu.memory_space<vmem>>, vector<32x16xf32>
    %c0_1 = arith.constant 0 : index
    %c0_2 = arith.constant 0 : index
    %c0_3 = arith.constant 0 : index
    %1 = vector.load %arg2[%c0_1, %c0_2, %c0_3] : memref<1x16x128xf32, #tpu.memory_space<vmem>>, vector<1x16x128xf32>
    %2 = vector.shape_cast %1 : vector<1x16x128xf32> to vector<16x128xf32>
    %cst = arith.constant dense<0.000000e+00> : vector<32x128xf32>
    %3 = tpu.matmul %0, %2, %cst {dimension_numbers = #tpu.dot_dimension_numbers<[1], [0], [0], [1], [0, 0, 1, 1], [], []>, precision = #tpu.contract_precision<fp32>} : vector<32x16xf32>, vector<16x128xf32>, vector<32x128xf32> -> vector<32x128xf32>
    %cst_4 = arith.constant 0.000000e+00 : f32
    %4 = vector.broadcast %cst_4 : f32 to vector<32x128xf32>
    %5 = arith.maximumf %3, %4 : vector<32x128xf32>
    %c0_5 = arith.constant 0 : index
    %c0_6 = arith.constant 0 : index
    %c0_7 = arith.constant 0 : index
    %6 = vector.load %arg4[%c0_5, %c0_6, %c0_7] : memref<1x32x128xf32, #tpu.memory_space<vmem>>, vector<1x32x128xf32>
    %7 = vector.shape_cast %6 : vector<1x32x128xf32> to vector<32x128xf32>
    %8 = vector.shape_cast %5 : vector<32x128xf32> to vector<1x32x128xf32>
    tpu.vector_store %arg4[%c0_5, %c0_6, %c0_7], %8 {strides = array<i32>} : memref<1x32x128xf32, #tpu.memory_space<vmem>>, vector<1x32x128xf32>,
    return
  }
  func.func @transform_0(%arg0: i32, %arg1: i32) -> (i32, i32, i32) {
    %c0_i32 = arith.constant 0 : i32
    %c0_i32_0 = arith.constant 0 : i32
    return %arg1, %c0_i32, %arg0 : i32, i32, i32
  }
  func.func @transform_1(%arg0: i32, %arg1: i32) -> (i32, i32) {
    %c0_i32 = arith.constant 0 : i32
    %c0_i32_0 = arith.constant 0 : i32
    %c0_i32_1 = arith.constant 0 : i32
    return %c0_i32, %c0_i32_0 : i32, i32
  }
  func.func @transform_2(%arg0: i32, %arg1: i32) -> (i32, i32, i32) {
    %c0_i32 = arith.constant 0 : i32
    %c0_i32_0 = arith.constant 0 : i32
    return %arg1, %c0_i32, %arg0 : i32, i32, i32
  }
}

</mosaic_0001>

<bundles_post_ra>
// kernel: encoder_forward.1
= control target key start
LH: loop header
LB: loop body
LE: loop exit
PB: predicated region body
PF: predicated region fallthrough
CT: control target
= control target key end

     0   :  { %7 = vsyncpa [#allocation4], 0  ;;  %s1442_s0 = inlined_call_operand.vmem [shape: f32[2,16,200], index: 0, kind: input, shape index: {}]   ;;  %s1443_s1 = inlined_call_operand.vmem [shape: f32[32,16], index: 1, kind: input, shape index: {}]   ;;  %s1444_s2 = inlined_call_operand.hbm [shape: f32[2,32,200], index: 2, kind: output, shape index: {}]  }
   0x1   :  { %9 = vsyncpa [#allocation4 + $0x1], 0  ;;  %s1255_s9 = smov 0   ;;  %s1257_s10 = smov 0  }
   0x2   :  { %s1259_s11 = smov 0   ;;  %s1261_s12 = smov 0  }
   0x3   :  { %s1263_s13 = smov 0   ;;  %s1265_s14 = smov 0  }
   0x4   :  { %s1267_s15 = smov 0   ;;  %s1269_s16 = smov 0  }
   0x5 LB: > { %s911_s17 = sadd.s32 4294967295, %s1234_s16   ;;  %s912_s18 = sadd.s32 4294967294, %s1234_s16   ;;  %s1234_s16 = sphi %s1269_s16, %s15_s16   ;;  %s1230_s15 = sphi %s1267_s15, %s1454_s15   ;;  %s1226_s14 = sphi %s1265_s14, %s1453_s14   ;;  %s1222_s13 = sphi %s1263_s13, %s1452_s13   ;;  %s1218_s12 = sphi %s1261_s12, %s1451_s12   ;;  %s1214_s11 = sphi %s1259_s11, %s1450_s11   ;;  %s1210_s10 = sphi %s1257_s10, %s1449_s10   ;;  %s1206_s9 = sphi %s1255_s9, %s1448_s9  }
   0x6   : > { %s24_s19 = sadd.s32 1, %s1226_s14  ;;  %s27_s20 = sadd.s32 1, %s1230_s15 }
   0x7   : > { %p25_p0 = scmp.ge.s32.totalorder %s24_s19, 2  ;;  %p43_p1 = scmp.ne.s32.totalorder %s1214_s11, %s1210_s10 }
   0x8   : > { %p44_p2 = scmp.eq.s32.totalorder %s1234_s16, 0  ;;  %p96_p5 = scmp.eq.s32.totalorder %s911_s17, 3 }
   0x9   : > { %s1456_s19 = smov (%p25_p0, %s24_s19), 0  ;;  %s1458_s20 = smov (!%p25_p0, %s27_s20), %s1230_s15 }
   0xa   : > { %s31_s21 = ssub.s32 %s1226_s14, %s1456_s19  ;;  %p1307_p3 = por %p44_p2, %p43_p1 }
   0xb   : > { %p29_p4 = scmp.ge.s32.totalorder %s1458_s20, 2  ;;  %p101_p6 = scmp.ne.s32.totalorder %s1210_s10, %s1206_s9 }
   0xc   : > { %p102_p7 = scmp.eq.s32.totalorder %s912_s18, 3  ;;  %p1315_p8 = por %p96_p5, %p43_p1 }
   0xd   : > { %s1460_s20 = smov (%p29_p4, %s1458_s20), 0  ;;  %s36_s27 = sadd.s32 1, %s1214_s11 }
   0xe   : > { %p1319_p9 = por %p102_p7, %p101_p6  ;;  %s32_s25 = ssub.s32 %s1230_s15, %s1460_s20 }
   0xf   : > { %s33_s26 = sor.u32 %s32_s25, %s31_s21  ;;  %p914_p11 = scmp.ge.s32.totalorder %s1234_s16, 4 }
  0x10   : > { %p34_p10 = scmp.eq.s32.totalorder %s33_s26, 0 }
  0x11   : > { %121 = sbr.rel (%p914_p11) target bundleno = 31 (0x1f), region = 20 }
  0x12   : > { %s1327_s28 = scalar_select %p34_p10, %s1214_s11, %s36_s27  }
  0x18   : > { %124 = sbr.rel (!%p1307_p3) target bundleno = 31 (0x1f), region = 24  ;;  %s126_s29 = sand.u32 (%p1307_p3), 1, %s1214_s11  }
  0x19   : > { %s916_s30 = sshll.u32 (%p1307_p3), %s1226_s14, 2  ;;  %s915_s3 = sshll.u32 (%p1307_p3), %s126_s29, 4 }
  0x1a   : > { %s130_s4 = sadd.s32 (%p1307_p3), %s1230_s15, %s916_s30  ;;  %s128_s17 = scalar_lea.vmem (%p1307_p3), [#allocation2], %s915_s3 }
  0x1b   : > { %s917_s5 = sshll.u32 (%p1307_p3), %s130_s4, 3 }
  0x1c   : > { %s132_s8 = scalar_lea.vmem (%p1307_p3), %s1442_s0, %s917_s5 }
  0x1d   : > { %v162_v0 = vld [vmem:[%s132_s8] sm:$0xff] (%p1307_p3)  ;;  %v164_v1 = vld [vmem:[%s132_s8 + $0x10] sm:$0xff] (%p1307_p3) }
  0x1e   : > { %163 = vst [vmem:[%s128_s17] sm:$0xff] (%p1307_p3), %v162_v0  ;;  %165 = vst [vmem:[%s128_s17 + $0x8] sm:$0xff] (%p1307_p3), %v164_v1 }
  0x1f PF: > { %p918_p12 = scmp.ge.s32.totalorder %s1234_s16, 1  ;;  %p170_p13 = scmp.lt.s32.totalorder %s1234_s16, 5 }
  0x21   : > { %p171_p0 = pnand %p918_p12, %p170_p13 }
  0x22   : > { %s1341_s18 = sand.u32 (!%p171_p0), 1, %s1210_s10   ;;  %v198_v2 = vld [vmem:[%s1443_s1] sm:$0xff] (!%p171_p0)  ;;  %vm204_vm0 = vcmask (!%p171_p0), 130048   ;;  %v199_v3 = vld [vmem:[%s1443_s1 + $0x8] sm:$0xff] (!%p171_p0)  ;;  %v200_v4 = vld [vmem:[%s1443_s1 + $0x10] sm:$0xff] (!%p171_p0)  ;;  %s922_s6 = sshll.u32 (!%p171_p0), %s1218_s12, 3 }
  0x23   : > { %174 = sbr.rel (%p171_p0) target bundleno = 300 (0x12c), region = 62  ;;  %s919_s30 = sshll.u32 (!%p171_p0), %s1341_s18, 4  ;;  %v206_v5 = vsel (!%p171_p0), %vm204_vm0, %v198_v2, 0  ;;  %v209_v6 = vsel (!%p171_p0), %vm204_vm0, %v199_v3, 0  ;;  %v212_v7 = vsel (!%p171_p0), %vm204_vm0, %v200_v4, 0  ;;  %v201_v8 = vld [vmem:[%s1443_s1 + $0x18] sm:$0xff] (!%p171_p0) }
  0x24   : > { %v1356_v9 = vand.u32 (!%p171_p0), 4294901760, %v206_v5  ;;  %v1358_v10 = vand.u32 (!%p171_p0), 4294901760, %v209_v6  ;;  %v1360_v11 = vand.u32 (!%p171_p0), 4294901760, %v212_v7  ;;  %v215_v12 = vsel (!%p171_p0), %vm204_vm0, %v201_v8, 0  ;;  %s179_s5 = scalar_lea.vmem (!%p171_p0), [#allocation2], %s919_s30  ;;  %s920_s7 = sshll.u32 (!%p171_p0), %s1341_s18, 5 }
  0x25   : > { %v202_v13 = vld [vmem:[%s179_s5] sm:$0xff] (!%p171_p0)  ;;  %v203_v14 = vld [vmem:[%s179_s5 + $0x8] sm:$0xff] (!%p171_p0)  ;;  %v1362_v15 = vand.u32 (!%p171_p0), 4294901760, %v215_v12  ;;  %s825_s8 = sadd.s32 (!%p171_p0), %s1222_s13, %s922_s6  ;;  %s197_s17 = scalar_lea.vmem (!%p171_p0), [#allocation3], %s920_s7 }
  0x26   : > { %v218_v16 = vand.u32 (!%p171_p0), 4294901760, %v202_v13  ;;  %v221_v17 = vand.u32 (!%p171_p0), 4294901760, %v203_v14  ;;  %v285_v18 = vsub.f32 (!%p171_p0), %v206_v5, %v1356_v9  ;;  %v295_v19 = vsub.f32 (!%p171_p0), %v209_v6, %v1358_v10  ;;  %s828_s21 = sshll.u32 (!%p171_p0), %s197_s17, 4  ;;  %s923_s22 = sshll.u32 (!%p171_p0), %s825_s8, 7  ;;  %s1383_s21 = int_to_ptr.vmem [resolvable:$true] %s828_s21 }
  0x27   : > { %v305_v20 = vsub.f32 (!%p171_p0), %v212_v7, %v1360_v11  ;;  %v315_v21 = vsub.f32 (!%p171_p0), %v215_v12, %v1362_v15  ;;  %s1388_s25 = scalar_lea.hbm (!%p171_p0), %s1444_s2, %s923_s22  ;;  %s814_s26 = scalar_lea.sflag (!%p171_p0), [#allocation4], %s1341_s18 }
  0x28   : > { %v1022_v22 = vpack.c.bf16 (!%p171_p0), %v221_v17, %v218_v16  ;;  %v286_v23 = vand.u32 (!%p171_p0), 4294901760, %v285_v18  ;;  %v296_v24 = vand.u32 (!%p171_p0), 4294901760, %v295_v19  ;;  %v326_v25 = vsub.f32 (!%p171_p0), %v202_v13, %v218_v16  ;;  %s1140_s27 = scalar_lea.vmem (!%p171_p0), %s1383_s21, 512  ;;  %s1236_s29 = smov (!%p171_p0), [#allocation3]  }
  0x29   : > { %v306_v26 = vand.u32 (!%p171_p0), 4294901760, %v305_v20  ;;  %v333_v27 = vsub.f32 (!%p171_p0), %v203_v14, %v221_v17  ;;  %v316_v28 = vand.u32 (!%p171_p0), 4294901760, %v315_v21  ;;  %p1141_p1 = scmp.ne.s32.totalorder (!%p171_p0), %s1383_s21, %s1140_s27  ;;  %s1144_s30 = sshll.u32 (!%p171_p0), %s1236_s29, 4  ;;  %s1145_s30 = int_to_ptr.vmem [resolvable:$false] %s1144_s30 }
  0x2a   : > { %1035 = vmatprep.subr.bf16.mxu0 %v1022_v22  ;;  %1023 = vmatprep.subr.bf16.mxu1 %v1022_v22  ;;  %v287_v29 = vsub.f32 %v285_v18, %v286_v23  ;;  %v297_v30 = vsub.f32 %v295_v19, %v296_v24  ;;  %v327_v31 = vand.u32 4294901760, %v326_v25  ;;  %s1146_s3 = scalar_lea.vmem %s1145_s30, 1024  ;;  %p1147_p4 = scmp.lt.s32.totalorder %s1383_s21, %s1145_s30 }
  0x2b   : > { %1037 = vmatpush3.bf16.msra.mxu0 %v1022_v22  ;;  %1025 = vmatpush3.bf16.msra.mxu1 %v1022_v22  ;;  %v307_v32 = vsub.f32 %v305_v20, %v306_v26  ;;  %v334_v33 = vand.u32 4294901760, %v333_v27  ;;  %v317_v34 = vsub.f32 %v315_v21, %v316_v28  ;;  %v1030_v45 = vpack.c.bf16 %v333_v27, %v326_v25  ;;  %p1142_p2 = pnand %p1141_p1, %p1315_p8  ;;  %p1148_p5 = scmp.lt.s32.totalorder %s1146_s3, %s1140_s27 }
  0x2c   : > { %996 = vmatprep.mubr.f32.mxu0 %v286_v23  ;;  %v288_v35 = vand.u32 4294901760, %v287_v29  ;;  %v298_v36 = vand.u32 4294901760, %v297_v30  ;;  %v328_v37 = vsub.f32 %v326_v25, %v327_v31 }
  0x2d   : > { %v308_v38 = vand.u32 4294901760, %v307_v32  ;;  %v335_v39 = vsub.f32 %v333_v27, %v334_v33  ;;  %v1038_v40 = vpack.c.bf16 %v334_v33, %v327_v31  ;;  %v318_v43 = vand.u32 4294901760, %v317_v34  ;;  %p1143_p3 = pneg %p1142_p2  ;;  %p1149_p6 = por %p1148_p5, %p1147_p4 }
  0x2e   : > { %966 = vmatprep.mubr.f32.mxu1 %v288_v35  ;;  %997 = vmatmul.mubr.f32.vlgmr.msra.gmra.mrb[0].mxu0 %v296_v24  ;;  %v329_v41 = vand.u32 4294901760, %v328_v37 }
  0x2f   : > { %967 = vmatmul.mubr.f32.vlgmr.msra.gmra.mrb[0].mxu1 %v298_v36  ;;  %999 = vmatprep.mubr.f32.mxu0 %v306_v26  ;;  %v336_v42 = vand.u32 4294901760, %v335_v39  ;;  %p1150_p7 = pnand %p1149_p6, %p1143_p3 }
  0x30   : > { %969 = vmatprep.mubr.f32.mxu1 %v308_v38  ;;  %1039 = vmatprep.subr.bf16.mxu0 %v1038_v40 }
  0x31   : > { %v1026_v44 = vpack.c.bf16 %v336_v42, %v329_v41  ;;  %1041 = vmatpush3.bf16.msra.mxu0 %v1038_v40 }
  0x32   : > { %1000 = vmatmul.mubr.f32.gmra.mrb[2].mxu0 %v316_v28  ;;  %1043 = vmatprep.subr.bf16.mxu0 %v1022_v22 }
  0x33   : > { %1027 = vmatprep.subr.bf16.mxu1 %v1026_v44  ;;  %970 = vmatmul.mubr.f32.gmra.mrb[2].mxu1 %v318_v43 }
  0x34   : > { %1029 = vmatpush3.bf16.msra.mxu1 %v1026_v44  ;;  %1006 = vmatprep.mubr.f32.mxu0 %v1356_v9 }
  0x35   : > { %976 = vmatprep.mubr.f32.mxu1 %v1356_v9  ;;  %1031 = vmatprep.subr.bf16.mxu1 %v1030_v45 }
  0x36   : > { %1007 = vmatmul.mubr.f32.vlgmr.msra.gmra.mrb[0].mxu0 %v1358_v10 }
  0x37   : > { %977 = vmatmul.mubr.f32.vlgmr.msra.gmra.mrb[0].mxu1 %v1358_v10  ;;  %1009 = vmatprep.mubr.f32.mxu0 %v1360_v11 }
  0x38   : > { %979 = vmatprep.mubr.f32.mxu1 %v1360_v11  ;;  %1033 = vmatpush3.bf16.msra.mxu1 %v1030_v45 }
  0x39   : > { %1045 = vmatpush3.bf16.msra.mxu0 %v1022_v22 }
  0x3a   : > { %1010 = vmatmul.mubr.f32.gmra.mrb[2].mxu0 %v1362_v15 }
  0x3b   : > { %980 = vmatmul.mubr.f32.gmra.mrb[2].mxu1 %v1362_v15  ;;  %1016 = vmatprep.mubr.f32.mxu0 %v1356_v9 }
  0x3c   : > { %986 = vmatprep.mubr.f32.mxu1 %v285_v18 }
  0x3e   : > { %1017 = vmatmul.mubr.f32.vlgmr.msra.gmra.mrb[0].mxu0 %v1358_v10 }
  0x3f   : > { %987 = vmatmul.mubr.f32.vlgmr.msra.gmra.mrb[0].mxu1 %v295_v19  ;;  %1019 = vmatprep.mubr.f32.mxu0 %v1360_v11 }
  0x40   : > { %989 = vmatprep.mubr.f32.mxu1 %v305_v20 }
  0x42   : > { %1020 = vmatmul.mubr.f32.gmra.mrb[2].mxu0 %v1362_v15 }
  0x43   : > { %990 = vmatmul.mubr.f32.gmra.mrb[2].mxu1 %v315_v21 }
 0x111   : > { %v1018_v46 = vpop.f32.mrb[0].mxu0 }
 0x112   : > { %v988_v47 = vpop.f32.mrb[0].mxu1  ;;  %v783_v48 = vpop.f32.mrb[1].mxu0 }
 0x113   : > { %v1046_v49 = vadd.f32 %v1018_v46, %v988_v47  ;;  %v495_v50 = vpop.f32.mrb[1].mxu1 }
 0x114   : > { %v1047_v51 = vadd.f32 %v783_v48, %v495_v50 }
 0x115   : > { %v806_v52 = vmax.f32 %v1046_v49, 0.0  ;;  %v1021_v53 = vpop.f32.mrb[2].mxu0 }
 0x116   : > { %v805_v54 = vmax.f32 %v1047_v51, 0.0  ;;  %v991_v55 = vpop.f32.mrb[2].mxu1  ;;  %v795_v56 = vpop.f32.mrb[3].mxu0 }
 0x117   : > { %810 = vst [vmem:[%s197_s17 + $0x8] sm:$0xff] %v806_v52  ;;  %v1048_v57 = vadd.f32 %v1021_v53, %v991_v55  ;;  %v509_v58 = vpop.f32.mrb[3].mxu1 }
 0x118   : > { %809 = vst [vmem:[%s197_s17] sm:$0xff] %v805_v54  ;;  %v1049_v59 = vadd.f32 %v795_v56, %v509_v58 }
 0x119   : > { %v808_v60 = vmax.f32 %v1048_v57, 0.0 }
 0x11a   : > { %v807_v61 = vmax.f32 %v1049_v59, 0.0 }
 0x11b   : > { %812 = vst [vmem:[%s197_s17 + $0x18] sm:$0xff] %v808_v60 }
 0x11c   : > { %811 = vst [vmem:[%s197_s17 + $0x10] sm:$0xff] %v807_v61 }
 0x11d   : > { %1153 = shalt.err (!%p1150_p7)
}
 0x11e   : > { %s1154_s4 = scalar_lea.hbm %s1388_s25, 512  ;;  %s1158_s7 = scalar_lea.hbm %s1444_s2, 2048 }
 0x11f   : > { %p1155_p10 = scmp.ne.s32.totalorder %s1388_s25, %s1154_s4  ;;  %p1159_p13 = scmp.lt.u32.totalorder %s1388_s25, %s1444_s2 }
 0x120   : > { %p1160_p0 = scmp.lt.u32.totalorder %s1158_s7, %s1154_s4  ;;  %p1162_p2 = scmp.lt.u32.totalorder %s1154_s4, %s1388_s25 }
 0x121   : > { %p1156_p11 = pnand %p1155_p10, %p1315_p8 }
 0x122   : > { %p1161_p1 = por %p1160_p0, %p1159_p13 }
 0x123   : > { %p1157_p12 = pneg %p1156_p11 }
 0x124   : > { %p1163_p3 = por %p1162_p2, %p1161_p1 }
 0x126   : > { %p1164_p4 = pnand %p1163_p3, %p1157_p12 }
 0x128   : > { %1167 = shalt.err (!%p1164_p4)
}
 0x129   : > { %s1237_s22 = smov 128   ;;  %s1238_s12 = smov 256  }
 0x12a   : > { %s1239_s13 = smov 8  }
 0x12b   : > { %1066 = dma.vmem_to_hbm [thread:$0]  (%p1315_p8), %s1383_s21, 512, %s1388_s25, %s814_s26, %s1237_s22, %s1238_s12, %s1239_s13  }
 0x12c PF: > { %p1072_p5 = scmp.ge.s32.totalorder %s1234_s16, 2  ;;  %s843_s27 = sand.u32 1, %s1206_s9  }
 0x12d   : > { %s844_s29 = scalar_lea.sflag [#allocation4], %s843_s27 }
 0x12e   : > { %p1069_p6 = pnand %p1072_p5, %p1319_p9 }
 0x130   : > { %1201 = dma.done.wait (!%p1069_p6), %s844_s29, 512  }
 0x131   : > { %1203 = vsyncadd (!%p1069_p6), %s844_s29, 4294966784  ;;  %s15_s16 = sadd.s32 1, %s1234_s16   ;;  %s1448_s9 = smov %s1210_s10 }
 0x132   : > { %p12_p7 = scmp.ge.s32.totalorder %s15_s16, 6   ;;  %s1449_s10 = smov %s1214_s11 }
 0x133   : > { %s1450_s11 = smov %s1327_s28  ;;  %s1451_s12 = smov %s1226_s14 }
 0x134   : > { %s1452_s13 = smov %s1230_s15  ;;  %s1453_s14 = smov %s1456_s19 }
 0x135   : > { %s1454_s15 = smov %s1460_s20  ;;  %14 = sbr.rel (!%p12_p7) target bundleno = 5 (0x5), region = 106 }
 0x13c   :  { %849 = vsyncpa [#allocation4], 1 }
 0x13d   :  { %851 = vsyncpa [#allocation4 + $0x1], 1 }

</bundles_post_ra>
